<compile_context>
chip_gen: v5e
topology: v5e:2x2
jax: 0.10.0
libtpu: 0.0.40
codegen_flags: <defaults>
</compile_context>

<pallas_src>
import math

import jax
import jax.numpy as jnp
from jax.experimental import pallas as pl
from jax.experimental.pallas import tpu as pltpu


# ---------------------------------------------------------------------------
# Irrep bookkeeping (mirrors e3nn's `rs` helpers) -- plain Python glue.
# Rs = list of (multiplicity, l); parity omitted (all +1) for this synthetic setup.
# ---------------------------------------------------------------------------
def rs_simplify(Rs):
    out = []
    for mul, l in Rs:
        if out and out[-1][1] == l:
            out[-1] = (out[-1][0] + mul, l)
        else:
            out.append((mul, l))
    return out


def rs_dim(Rs):
    return sum(mul * (2 * l + 1) for mul, l in Rs)


def _offsets(Rs):
    off, res = 0, []
    for mul, l in Rs:
        res.append(off)
        off += mul * (2 * l + 1)
    return res


# Real Clebsch-Gordan (Wigner-3j, real basis) tensors for l <= 1,
# indexed [m_out, m_in1, m_in2], normalized so that sum of squares == 1.
def real_cg(l_out, l1, l2):
    key = (l_out, l1, l2)
    if key == (0, 0, 0):
        return jnp.ones((1, 1, 1), jnp.float32)
    if key == (1, 0, 1):
        return jnp.eye(3, dtype=jnp.float32)[:, None, :] / math.sqrt(3.0)
    if key == (1, 1, 0):
        return jnp.eye(3, dtype=jnp.float32)[:, :, None] / math.sqrt(3.0)
    if key == (0, 1, 1):
        return jnp.eye(3, dtype=jnp.float32)[None, :, :] / math.sqrt(3.0)
    if key == (1, 1, 1):
        eps = jnp.zeros((3, 3, 3), jnp.float32)
        for a, b, c, s in [(0, 1, 2, 1.0), (1, 2, 0, 1.0), (2, 0, 1, 1.0),
                           (0, 2, 1, -1.0), (2, 1, 0, -1.0), (1, 0, 2, -1.0)]:
            eps = eps.at[a, b, c].set(s)
        return eps / math.sqrt(6.0)
    raise NotImplementedError(key)


def build_kernel_tensor(Rs_in1, Rs_in2, Rs_out, key):
    """Builds the fused bilinear weight K[dim_out, dim_in1, dim_in2].

    Mathematically equivalent to the module's
        (T.t() @ self.kernel().T).T.reshape(dim_out, dim_in1, dim_in2)
    where T is the CG tensor-product matrix (with selection rule restricted to
    the output ls) and self.kernel() is KernelLinear's block mixing matrix.
    """
    # TODO(synk): e3nn's exact 'component' normalization constants for T and
    # KernelLinear are not reproduced bit-exactly; weights are synthetic anyway.
    Rs_in1, Rs_in2, Rs_out = rs_simplify(Rs_in1), rs_simplify(Rs_in2), rs_simplify(Rs_out)
    d1, d2, do = rs_dim(Rs_in1), rs_dim(Rs_in2), rs_dim(Rs_out)
    off1, off2, offo = _offsets(Rs_in1), _offsets(Rs_in2), _offsets(Rs_out)

    K = jnp.zeros((do, d1, d2), jnp.float32)
    for (mo, lo), oo in zip(Rs_out, offo):
        # tensor-product paths feeding this output l (o3.selection_rule with lfilter)
        paths = []
        for (m1, l1), o1 in zip(Rs_in1, off1):
            for (m2, l2), o2 in zip(Rs_in2, off2):
                if abs(l1 - l2) <= lo <= l1 + l2:
                    paths.append((m1, l1, o1, m2, l2, o2))
        assert paths, "output irrep not reachable (allow_change_output=False)"
        fan_in = sum(m1 * m2 for m1, _, _, m2, _, _ in paths)
        for (m1, l1, o1, m2, l2, o2) in paths:
            key, sub = jax.random.split(key)
            w = jax.random.normal(sub, (mo, m1, m2), jnp.float32) / math.sqrt(fan_in)
            C = real_cg(lo, l1, l2)
            blk = jnp.einsum('uab,xyz->uxaybz', w, C).reshape(
                mo * (2 * lo + 1), m1 * (2 * l1 + 1), m2 * (2 * l2 + 1))
            K = K.at[oo:oo + mo * (2 * lo + 1),
                     o1:o1 + m1 * (2 * l1 + 1),
                     o2:o2 + m2 * (2 * l2 + 1)].add(blk)
    return K


# ---------------------------------------------------------------------------
# Pallas kernel: out[z, k] = sum_{i,j} K[k,i,j] * f1[z,i] * f2[z,j]
#   G = (f1 @ R) * (f2 @ T)         lane-dense outer product, built on the MXU
#   out = G @ Kmat                  Kmat = K.transpose(1,2,0).reshape(d1*d2, dout)
# ---------------------------------------------------------------------------
def _pick_tz(z, tz_pref):
    """Row-tile size: big enough to amortize per-step overhead, >=2 grid steps
    on large inputs (v7x has 2 TensorCores), full-extent block for tiny z."""
    if z <= 256:
        return z                      # single full-extent block (legal block shape)
    tz = max(256, (tz_pref // 256) * 256)          # multiple of 256 (MXU/sublane)
    half = pl.cdiv(pl.cdiv(z, 2), 256) * 256       # guarantees >= 2 grid steps
    return min(tz, half)


def learnable_tensor_product(features_1, features_2, K, *, tz=2048):
    *size, d1 = features_1.shape
    *size2, d2 = features_2.shape
    assert list(size) == list(size2)
    dout = K.shape[0]
    assert K.shape == (dout, d1, d2)

    f1 = features_1.reshape(-1, d1)
    f2 = features_2.reshape(-1, d2)
    z = f1.shape[0]

    tz = _pick_tz(z, tz)
    grid = (pl.cdiv(z, tz),)          # partial tail block handled by Pallas; no jnp.pad

    # Lane-dense 2-D weight: contraction axis (d1*d2) on sublanes, output
    # channel k on lanes.  Constant index_map -> stays resident across steps.
    kmat = jnp.transpose(K, (1, 2, 0)).reshape(d1 * d2, dout)

    # Constant 0/1 expansion matrices (built once, tiny):
    #   R[i, i*d2+j] = 1  ->  (f1 @ R)[z, i*d2+j] = f1[z, i]
    #   T[j, i*d2+j] = 1  ->  (f2 @ T)[z, i*d2+j] = f2[z, j]
    R = jnp.repeat(jnp.eye(d1, dtype=jnp.float32), d2, axis=1)     # (d1, d1*d2)
    T = jnp.tile(jnp.eye(d2, dtype=jnp.float32), (1, d1))          # (d2, d1*d2)

    def kernel(f1_ref, f2_ref, r_ref, t_ref, kmat_ref, o_ref):
        f1b = f1_ref[...]                                          # (tz, d1)  f32
        f2b = f2_ref[...]                                          # (tz, d2)  f32
        # Lane-dense outer product via two constant expansion matmuls (MXU),
        # then a single lane-dense VPU multiply.
        g = (jnp.dot(f1b, r_ref[...], preferred_element_type=jnp.float32)
             * jnp.dot(f2b, t_ref[...], preferred_element_type=jnp.float32))
        # Single fused MXU matmul: (tz, d1*d2) @ (d1*d2, dout), f32 accumulate.
        o_ref[...] = jnp.dot(
            g, kmat_ref[...], preferred_element_type=jnp.float32
        ).astype(o_ref.dtype)

    flops = 2 * z * d1 * d2 * (dout + d1 + d2)
    bytes_accessed = 4 * (z * (d1 + d2 + dout)
                          + d1 * d2 * (dout + d1 + d2))
    cost = pl.CostEstimate(flops=flops, transcendentals=0,
                           bytes_accessed=bytes_accessed)

    # VMEM budget: double-buffered I/O tiles + g intermediate + resident weights.
    vmem_bytes = 4 * (2 * tz * (d1 + d2 + dout)
                      + tz * d1 * d2
                      + 2 * (d1 + d2 + dout) * d1 * d2)
    cp_kwargs = dict(dimension_semantics=("parallel",))
    if vmem_bytes > 12 * 1024 * 1024:        # only needed for large swept tz (v5e 16 MiB default)
        cp_kwargs["vmem_limit_bytes"] = min(2 * vmem_bytes, 48 * 1024 * 1024)

    out = pl.pallas_call(
        kernel,
        out_shape=jax.ShapeDtypeStruct((z, dout), features_1.dtype),
        grid=grid,
        in_specs=[
            pl.BlockSpec((tz, d1), lambda zi: (zi, 0)),
            pl.BlockSpec((tz, d2), lambda zi: (zi, 0)),
            pl.BlockSpec((d1, d1 * d2), lambda zi: (0, 0)),
            pl.BlockSpec((d2, d1 * d2), lambda zi: (0, 0)),
            pl.BlockSpec((d1 * d2, dout), lambda zi: (0, 0)),
        ],
        out_specs=pl.BlockSpec((tz, dout), lambda zi: (zi, 0)),
        compiler_params=pltpu.CompilerParams(**cp_kwargs),
        cost_estimate=cost,
    )(f1, f2, R, T, kmat)

    return out.reshape(*size, dout)


if __name__ == "__main__":
    # Rs_in1 = 4x scalars + 4x vectors -> dim 16
    # Rs_in2 = 4x scalars + 4x vectors -> dim 16
    # Rs_out = 8x scalars + 8x vectors -> dim 32
    Rs_in1 = [(4, 0), (4, 1)]
    Rs_in2 = [(4, 0), (4, 1)]
    Rs_out = [(8, 0), (8, 1)]

    key = jax.random.PRNGKey(0)
    kw, k1, k2 = jax.random.split(key, 3)

    K = build_kernel_tensor(Rs_in1, Rs_in2, Rs_out, kw)      # (32, 16, 16)

    # features: [..., channel] = [batch=2, seq=8, dim]
    f1 = jax.random.normal(k1, (2, 8, rs_dim(Rs_in1)), jnp.float32)
    f2 = jax.random.normal(k2, (2, 8, rs_dim(Rs_in2)), jnp.float32)

    out = learnable_tensor_product(f1, f2, K)
    out = jax.block_until_ready(out)

    # correctness check against the module's einsum semantics
    ref = jnp.einsum('kij,zi,zj->zk', K,
                     f1.reshape(-1, rs_dim(Rs_in1)),
                     f2.reshape(-1, rs_dim(Rs_in2))).reshape(2, 8, -1)
    assert out.shape == (2, 8, rs_dim(Rs_out))
    assert jnp.allclose(out, ref, atol=1e-4, rtol=1e-4)

    print("KERNEL_OK")
</pallas_src>

<mosaic_0001>
module attributes {stable_mosaic.version = 11 : i64} {
  func.func @kernel(%arg0: i32, %arg1: memref<16x16xf32, #tpu.memory_space<vmem>>, %arg2: memref<16x16xf32, #tpu.memory_space<vmem>>, %arg3: memref<16x256xf32, #tpu.memory_space<vmem>>, %arg4: memref<16x256xf32, #tpu.memory_space<vmem>>, %arg5: memref<256x32xf32, #tpu.memory_space<vmem>>, %arg6: memref<16x32xf32, #tpu.memory_space<vmem>>) attributes {dimension_semantics = [#tpu.dimension_semantics<parallel>], iteration_bounds = array<i64: 1>, scalar_prefetch = 0 : i64, scratch_operands = 0 : i64, tpu.core_type = #tpu.core_type<tc>, window_params = [{transform_indices = @transform_0, window_bounds = array<i64: 16, 16>}, {transform_indices = @transform_1, window_bounds = array<i64: 16, 16>}, {pipeline_mode = #tpu.pipeline_mode<synchronous>, transform_indices = @transform_2, window_bounds = array<i64: 16, 256>}, {pipeline_mode = #tpu.pipeline_mode<synchronous>, transform_indices = @transform_3, window_bounds = array<i64: 16, 256>}, {pipeline_mode = #tpu.pipeline_mode<synchronous>, transform_indices = @transform_4, window_bounds = array<i64: 256, 32>}, {transform_indices = @transform_5, window_bounds = array<i64: 16, 32>}]} {
    %c0 = arith.constant 0 : index
    %c0_0 = arith.constant 0 : index
    %0 = vector.load %arg1[%c0, %c0_0] : memref<16x16xf32, #tpu.memory_space<vmem>>, vector<16x16xf32>
    %c0_1 = arith.constant 0 : index
    %c0_2 = arith.constant 0 : index
    %1 = vector.load %arg2[%c0_1, %c0_2] : memref<16x16xf32, #tpu.memory_space<vmem>>, vector<16x16xf32>
    %c0_3 = arith.constant 0 : index
    %c0_4 = arith.constant 0 : index
    %2 = vector.load %arg3[%c0_3, %c0_4] : memref<16x256xf32, #tpu.memory_space<vmem>>, vector<16x256xf32>
    %cst = arith.constant dense<0.000000e+00> : vector<16x256xf32>
    %3 = tpu.matmul %0, %2, %cst {dimension_numbers = #tpu.dot_dimension_numbers<[1], [0], [0], [1], [0, 0, 1, 1], [], []>} : vector<16x16xf32>, vector<16x256xf32>, vector<16x256xf32> -> vector<16x256xf32>
    %c0_5 = arith.constant 0 : index
    %c0_6 = arith.constant 0 : index
    %4 = vector.load %arg4[%c0_5, %c0_6] : memref<16x256xf32, #tpu.memory_space<vmem>>, vector<16x256xf32>
    %cst_7 = arith.constant dense<0.000000e+00> : vector<16x256xf32>
    %5 = tpu.matmul %1, %4, %cst_7 {dimension_numbers = #tpu.dot_dimension_numbers<[1], [0], [0], [1], [0, 0, 1, 1], [], []>} : vector<16x16xf32>, vector<16x256xf32>, vector<16x256xf32> -> vector<16x256xf32>
    %6 = arith.mulf %3, %5 : vector<16x256xf32>
    %c0_8 = arith.constant 0 : index
    %c0_9 = arith.constant 0 : index
    %7 = vector.load %arg5[%c0_8, %c0_9] : memref<256x32xf32, #tpu.memory_space<vmem>>, vector<256x32xf32>
    %cst_10 = arith.constant dense<0.000000e+00> : vector<16x32xf32>
    %8 = tpu.matmul %6, %7, %cst_10 {dimension_numbers = #tpu.dot_dimension_numbers<[1], [0], [0], [1], [0, 0, 1, 1], [], []>} : vector<16x256xf32>, vector<256x32xf32>, vector<16x32xf32> -> vector<16x32xf32>
    %c0_11 = arith.constant 0 : index
    %c0_12 = arith.constant 0 : index
    %9 = vector.load %arg6[%c0_11, %c0_12] : memref<16x32xf32, #tpu.memory_space<vmem>>, vector<16x32xf32>
    tpu.vector_store %arg6[%c0_11, %c0_12], %8 {strides = array<i32>} : memref<16x32xf32, #tpu.memory_space<vmem>>, vector<16x32xf32>,
    return
  }
  func.func @transform_0(%arg0: i32) -> (i32, i32) {
    %c0_i32 = arith.constant 0 : i32
    %c0_i32_0 = arith.constant 0 : i32
    return %arg0, %c0_i32 : i32, i32
  }
  func.func @transform_1(%arg0: i32) -> (i32, i32) {
    %c0_i32 = arith.constant 0 : i32
    %c0_i32_0 = arith.constant 0 : i32
    return %arg0, %c0_i32 : i32, i32
  }
  func.func @transform_2(%arg0: i32) -> (i32, i32) {
    %c0_i32 = arith.constant 0 : i32
    %c0_i32_0 = arith.constant 0 : i32
    %c0_i32_1 = arith.constant 0 : i32
    return %c0_i32, %c0_i32_0 : i32, i32
  }
  func.func @transform_3(%arg0: i32) -> (i32, i32) {
    %c0_i32 = arith.constant 0 : i32
    %c0_i32_0 = arith.constant 0 : i32
    %c0_i32_1 = arith.constant 0 : i32
    return %c0_i32, %c0_i32_0 : i32, i32
  }
  func.func @transform_4(%arg0: i32) -> (i32, i32) {
    %c0_i32 = arith.constant 0 : i32
    %c0_i32_0 = arith.constant 0 : i32
    %c0_i32_1 = arith.constant 0 : i32
    return %c0_i32, %c0_i32_0 : i32, i32
  }
  func.func @transform_5(%arg0: i32) -> (i32, i32) {
    %c0_i32 = arith.constant 0 : i32
    %c0_i32_0 = arith.constant 0 : i32
    return %arg0, %c0_i32 : i32, i32
  }
}

</mosaic_0001>

<bundles_post_ra>
// kernel: tpu_custom_call.1
= control target key start
LH: loop header
LB: loop body
LE: loop exit
PB: predicated region body
PF: predicated region fallthrough
CT: control target
= control target key end

     0   :  { %vm29_vm0 = vcmask 130048   ;;  %s486_s0 = inlined_call_operand.vmem [shape: f32[16,16], index: 0, kind: input, shape index: {}]   ;;  %s487_s1 = inlined_call_operand.vmem [shape: f32[16,16], index: 1, kind: input, shape index: {}]   ;;  %s488_s2 = inlined_call_operand.vmem [shape: f32[16,256], index: 2, kind: input, shape index: {}]   ;;  %s489_s3 = inlined_call_operand.vmem [shape: f32[16,256], index: 3, kind: input, shape index: {}]   ;;  %s490_s4 = inlined_call_operand.vmem [shape: f32[256,32], index: 4, kind: input, shape index: {}]   ;;  %s491_s5 = inlined_call_operand.hbm [shape: f32[16,32], index: 5, kind: output, shape index: {}]  }
   0x1   :  { %v84_v0 = vld [vmem:[%s489_s3 + $0x10] sm:$0xff]  ;;  %v85_v1 = vld [vmem:[%s489_s3 + $0x18] sm:$0xff]  ;;  %v82_v2 = vld [vmem:[%s489_s3] sm:$0xff] }
   0x2   :  { %106 = vmatpush.msra.mxu2 %v84_v0  ;;  %129 = vmatpush.msra.mxu3 %v85_v1  ;;  %v83_v3 = vld [vmem:[%s489_s3 + $0x8] sm:$0xff]  ;;  %v23_v4 = vld [vmem:[%s487_s1] sm:$0xff]  ;;  %v27_v5 = vld [vmem:[%s488_s2 + $0x10] sm:$0xff] }
   0x3   :  { %50 = vmatpush.msra.mxu0 %v27_v5  ;;  %v28_v6 = vld [vmem:[%s488_s2 + $0x18] sm:$0xff]  ;;  %v25_v7 = vld [vmem:[%s488_s2] sm:$0xff]  ;;  %v26_v9 = vld [vmem:[%s488_s2 + $0x8] sm:$0xff] }
   0x4   :  { %107 = vmatpush.msra.mxu2 %v82_v2  ;;  %130 = vmatpush.msra.mxu3 %v83_v3  ;;  %v21_v8 = vld [vmem:[%s486_s0] sm:$0xff]  ;;  %v157_v10 = vld [vmem:[%s490_s4 + $0x78] sm:$0xff]  ;;  %v156_v12 = vld [vmem:[%s490_s4 + $0x70] sm:$0xff] }
   0x5   :  { %245 = vmatmul.msk.f32.vlgmr.msra.gmra.mxu2 %vm29_vm0, %v23_v4  ;;  %247 = vmatmul.msk.f32.vlgmr.msra.gmra.mxu3 %vm29_vm0, %v23_v4  ;;  %v173_v11 = vld [vmem:[%s490_s4 + $0xf8] sm:$0xff]  ;;  %v172_v13 = vld [vmem:[%s490_s4 + $0xf0] sm:$0xff]  ;;  %v155_v14 = vld [vmem:[%s490_s4 + $0x68] sm:$0xff] }
   0x6   :  { %73 = vmatpush.msra.mxu1 %v28_v6  ;;  %51 = vmatpush.msra.mxu0 %v25_v7  ;;  %v24_v15 = vld [vmem:[%s487_s1 + $0x8] sm:$0xff]  ;;  %v154_v17 = vld [vmem:[%s490_s4 + $0x60] sm:$0xff]  ;;  %v153_v20 = vld [vmem:[%s490_s4 + $0x58] sm:$0xff] }
   0x7   :  { %241 = vmatmul.msk.f32.vlgmr.msra.gmra.mxu0 %vm29_vm0, %v21_v8  ;;  %249 = vmatpush.msrb.mxu2 %v157_v10  ;;  %v171_v16 = vld [vmem:[%s490_s4 + $0xe8] sm:$0xff]  ;;  %v170_v19 = vld [vmem:[%s490_s4 + $0xe0] sm:$0xff] }
   0x8   :  { %74 = vmatpush.msra.mxu1 %v26_v9  ;;  %174 = vmatpush.msrb.mxu0 %v157_v10  ;;  %v22_v18 = vld [vmem:[%s486_s0 + $0x8] sm:$0xff] }
   0x9   :  { %243 = vmatmul.msk.f32.vlgmr.msra.gmra.mxu1 %vm29_vm0, %v21_v8  ;;  %265 = vmatpush.msrb.mxu3 %v173_v11 }
   0xa   :  { %197 = vmatpush.msrb.mxu1 %v173_v11  ;;  %175 = vmatpush.msrb.mxu0 %v156_v12 }
   0xb   :  { %250 = vmatpush.msrb.mxu2 %v156_v12  ;;  %266 = vmatpush.msrb.mxu3 %v172_v13 }
   0xc   :  { %198 = vmatpush.msrb.mxu1 %v172_v13  ;;  %176 = vmatpush.msrb.mxu0 %v155_v14 }
   0xd   :  { %246 = vmatmul.msk.f32.gmra.mxu2 %vm29_vm0, %v24_v15  ;;  %248 = vmatmul.msk.f32.gmra.mxu3 %vm29_vm0, %v24_v15 }
   0xe   :  { %199 = vmatpush.msrb.mxu1 %v171_v16  ;;  %177 = vmatpush.msrb.mxu0 %v154_v17 }
   0xf   :  { %10 = vsyncpa [#allocation3], 0  ;;  %242 = vmatmul.msk.f32.gmra.mxu0 %vm29_vm0, %v22_v18  ;;  %v169_v21 = vld [vmem:[%s490_s4 + $0xd8] sm:$0xff]  ;;  %v152_v22 = vld [vmem:[%s490_s4 + $0x50] sm:$0xff]  ;;  %251 = vmatpush.msrb.mxu2 %v155_v14  ;;  %vm220_vm1 = vcmask 261120   ;;  %s229_s24 = sshll.u32 %s491_s5, 4  ;;  %s230_s24 = int_to_ptr.hbm [resolvable:$true] %s229_s24 }
  0x10   :  { %200 = vmatpush.msrb.mxu1 %v170_v19  ;;  %178 = vmatpush.msrb.mxu0 %v153_v20  ;;  %v168_v23 = vld [vmem:[%s490_s4 + $0xd0] sm:$0xff]  ;;  %v151_v24 = vld [vmem:[%s490_s4 + $0x48] sm:$0xff]  ;;  %v150_v26 = vld [vmem:[%s490_s4 + $0x40] sm:$0xff]  ;;  %s311_s25 = smov 128   ;;  %s312_s26 = smov 8  }
  0x11   :  { %244 = vmatmul.msk.f32.gmra.mxu1 %vm29_vm0, %v22_v18  ;;  %267 = vmatpush.msrb.mxu3 %v171_v16  ;;  %v167_v25 = vld [vmem:[%s490_s4 + $0xc8] sm:$0xff]  ;;  %v166_v27 = vld [vmem:[%s490_s4 + $0xc0] sm:$0xff]  ;;  %v149_v28 = vld [vmem:[%s490_s4 + $0x38] sm:$0xff] }
  0x12   :  { %201 = vmatpush.msrb.mxu1 %v169_v21  ;;  %179 = vmatpush.msrb.mxu0 %v152_v22  ;;  %v165_v29 = vld [vmem:[%s490_s4 + $0xb8] sm:$0xff]  ;;  %v148_v30 = vld [vmem:[%s490_s4 + $0x30] sm:$0xff]  ;;  %v147_v32 = vld [vmem:[%s490_s4 + $0x28] sm:$0xff] }
  0x13   :  { %252 = vmatpush.msrb.mxu2 %v154_v17  ;;  %268 = vmatpush.msrb.mxu3 %v170_v19  ;;  %v164_v31 = vld [vmem:[%s490_s4 + $0xb0] sm:$0xff]  ;;  %v163_v33 = vld [vmem:[%s490_s4 + $0xa8] sm:$0xff]  ;;  %v146_v34 = vld [vmem:[%s490_s4 + $0x20] sm:$0xff] }
  0x14   :  { %202 = vmatpush.msrb.mxu1 %v168_v23  ;;  %180 = vmatpush.msrb.mxu0 %v151_v24  ;;  %v162_v35 = vld [vmem:[%s490_s4 + $0xa0] sm:$0xff]  ;;  %v145_v36 = vld [vmem:[%s490_s4 + $0x18] sm:$0xff]  ;;  %v144_v38 = vld [vmem:[%s490_s4 + $0x10] sm:$0xff] }
  0x15   :  { %253 = vmatpush.msrb.mxu2 %v153_v20  ;;  %269 = vmatpush.msrb.mxu3 %v169_v21  ;;  %v161_v37 = vld [vmem:[%s490_s4 + $0x98] sm:$0xff]  ;;  %v160_v39 = vld [vmem:[%s490_s4 + $0x90] sm:$0xff]  ;;  %v143_v40 = vld [vmem:[%s490_s4 + $0x8] sm:$0xff] }
  0x16   :  { %203 = vmatpush.msrb.mxu1 %v167_v25  ;;  %181 = vmatpush.msrb.mxu0 %v150_v26  ;;  %v159_v41 = vld [vmem:[%s490_s4 + $0x88] sm:$0xff]  ;;  %v142_v42 = vld [vmem:[%s490_s4] sm:$0xff] }
  0x17   :  { %254 = vmatpush.msrb.mxu2 %v152_v22  ;;  %270 = vmatpush.msrb.mxu3 %v168_v23  ;;  %v158_v43 = vld [vmem:[%s490_s4 + $0x80] sm:$0xff]  ;;  %s310_s4 = smov [#allocation2]  }
  0x18   :  { %204 = vmatpush.msrb.mxu1 %v166_v27  ;;  %182 = vmatpush.msrb.mxu0 %v149_v28  ;;  %s227_s21 = sshll.u32 %s310_s4, 4  ;;  %s228_s21 = int_to_ptr.vmem [resolvable:$true] %s227_s21 }
  0x19   :  { %255 = vmatpush.msrb.mxu2 %v151_v24  ;;  %271 = vmatpush.msrb.mxu3 %v167_v25 }
  0x1a   :  { %205 = vmatpush.msrb.mxu1 %v165_v29  ;;  %183 = vmatpush.msrb.mxu0 %v148_v30 }
  0x1b   :  { %256 = vmatpush.msrb.mxu2 %v150_v26  ;;  %272 = vmatpush.msrb.mxu3 %v166_v27 }
  0x1c   :  { %206 = vmatpush.msrb.mxu1 %v164_v31  ;;  %184 = vmatpush.msrb.mxu0 %v147_v32 }
  0x1d   :  { %257 = vmatpush.msrb.mxu2 %v149_v28  ;;  %273 = vmatpush.msrb.mxu3 %v165_v29 }
  0x1e   :  { %207 = vmatpush.msrb.mxu1 %v163_v33  ;;  %185 = vmatpush.msrb.mxu0 %v146_v34 }
  0x1f   :  { %258 = vmatpush.msrb.mxu2 %v148_v30  ;;  %274 = vmatpush.msrb.mxu3 %v164_v31 }
  0x20   :  { %208 = vmatpush.msrb.mxu1 %v162_v35  ;;  %186 = vmatpush.msrb.mxu0 %v145_v36 }
  0x21   :  { %259 = vmatpush.msrb.mxu2 %v147_v32  ;;  %275 = vmatpush.msrb.mxu3 %v163_v33 }
  0x22   :  { %209 = vmatpush.msrb.mxu1 %v161_v37  ;;  %187 = vmatpush.msrb.mxu0 %v144_v38 }
  0x23   :  { %260 = vmatpush.msrb.mxu2 %v146_v34  ;;  %276 = vmatpush.msrb.mxu3 %v162_v35 }
  0x24   :  { %210 = vmatpush.msrb.mxu1 %v160_v39  ;;  %188 = vmatpush.msrb.mxu0 %v143_v40 }
  0x25   :  { %261 = vmatpush.msrb.mxu2 %v145_v36  ;;  %277 = vmatpush.msrb.mxu3 %v161_v37 }
  0x26   :  { %211 = vmatpush.msrb.mxu1 %v159_v41  ;;  %189 = vmatpush.msrb.mxu0 %v142_v42 }
  0x27   :  { %262 = vmatpush.msrb.mxu2 %v144_v38  ;;  %278 = vmatpush.msrb.mxu3 %v160_v39 }
  0x28   :  { %212 = vmatpush.msrb.mxu1 %v158_v43 }
  0x29   :  { %263 = vmatpush.msrb.mxu2 %v143_v40  ;;  %279 = vmatpush.msrb.mxu3 %v159_v41 }
  0x2b   :  { %264 = vmatpush.msrb.mxu2 %v142_v42  ;;  %280 = vmatpush.msrb.mxu3 %v158_v43 }
  0x84   :  { %v53_v44 = vpop.f32.mrf.mxu0 }
  0x86   :  { %v76_v45 = vpop.f32.mrf.mxu1 }
  0x88   :  { %v109_v46 = vpop.f32.mrf.mxu2  ;;  %v132_v47 = vpop.f32.mrf.mxu3 }
  0x89   :  { %v138_v48 = vmul.f32 %v109_v46, %v53_v44  ;;  %v139_v49 = vmul.f32 %v132_v47, %v76_v45 }
  0x8b   :  { %190 = vmatmul.f32.vlgmr.msrb.gmra.mxu0 %v138_v48  ;;  %213 = vmatmul.f32.vlgmr.msrb.gmra.mxu1 %v139_v49 }
  0x8c   :  { %v56_v50 = vpop.f32.mrf.mxu0 }
  0x8e   :  { %v79_v51 = vpop.f32.mrf.mxu1 }
  0x90   :  { %v112_v52 = vpop.f32.mrf.mxu2  ;;  %v135_v53 = vpop.f32.mrf.mxu3 }
  0x91   :  { %v140_v54 = vmul.f32 %v112_v52, %v56_v50  ;;  %v141_v55 = vmul.f32 %v135_v53, %v79_v51 }
  0x93   :  { %193 = vmatmul.f32.vlgmr.msrb.gmra.mxu2 %v140_v54  ;;  %216 = vmatmul.f32.vlgmr.msrb.gmra.mxu3 %v141_v55 }
 0x108   :  { %v191_v56 = vpop.f32.mrf.mxu0  ;;  %v214_v57 = vpop.f32.mrf.mxu1 }
 0x109   :  { %v215_v58 = vadd.f32 %v214_v57, %v191_v56 }
 0x10b   :  { %221 = vst.msk [vmem:[#allocation2] sm:$0xff] %vm220_vm1, %v215_v58 }
 0x116   :  { %v194_v59 = vpop.f32.mrf.mxu2  ;;  %v217_v60 = vpop.f32.mrf.mxu3 }
 0x117   :  { %v218_v61 = vadd.f32 %v217_v60, %v194_v59 }
 0x119   :  { %222 = vst.msk [vmem:[#allocation2 + $0x8] sm:$0xff] %vm220_vm1, %v218_v61 }
 0x11a   :  { %235 = dma.vmem_to_hbm [thread:$0]  %s228_s21, 256, %s230_s24, [#allocation3], %s311_s25, %s311_s25, %s312_s26  }
 0x11b   :  { %308 = dma.done.wait [#allocation3], 256  }
 0x11c   :  { %309 = vsyncadd [#allocation3], 4294967040 }
 0x11d   :  { %240 = vsyncpa [#allocation3], 1 }

</bundles_post_ra>
